<compile_context>
chip_gen: v5e
topology: v5e:2x2
jax: 0.10.0
libtpu: 0.0.40
codegen_flags: <defaults>
</compile_context>

<pallas_src>
import functools
import math

import jax
import jax.numpy as jnp
from jax.experimental import pallas as pl
from jax.experimental.pallas import tpu as pltpu


# Rows processed per in-kernel chunk: keeps the lane-sparse (rows, 1) reduce
# intermediate and its sublane->lane relayout small no matter how large the
# batch tile is, while the static unroll stays bounded (<= 16 chunks).
ROW_CHUNK = 4096


def logreg_kernel(x_ref, w_ref, b_ref, o_ref, *, d_total):
    # x_ref: (tile_b, tile_d) VMEM  -- advances with the grid (batch, feature)
    # w_ref: (1, tile_d)      VMEM  -- resident across batch tiles
    # b_ref: (1,)             SMEM  -- scalar bias
    # o_ref: (1, tile_b)      VMEM  -- lane-dense output block; also the f32
    #                                  accumulator across the feature axis k.
    k = pl.program_id(1)
    tile_b, tile_d = x_ref.shape

    @pl.when(k == 0)
    def _init():
        o_ref[...] = jnp.zeros_like(o_ref)

    w = w_ref[...]  # (1, tile_d)

    # Masking is only needed when the feature axis is tiled and its trailing
    # block is partial: Pallas pads partial blocks with unspecified data, and
    # masking the *product* keeps even NaN/Inf garbage out of the row sums.
    need_mask = (d_total % tile_d) != 0  # static Python bool
    if need_mask:
        col = k * tile_d + jax.lax.broadcasted_iota(jnp.int32, (1, tile_d), 1)
        valid = col < d_total

    # Exact-f32 contraction: VPU multiply + XLU lane reduction (the degenerate
    # N=1 MXU matmul is avoided on purpose -- compute slots have huge slack in
    # this HBM-bound kernel, and this keeps full f32 accuracy).  Each chunk's
    # (rows, 1) partial sums are relayouted (cheap XLU transpose) into the
    # lane-dense output block.
    for c0 in range(0, tile_b, ROW_CHUNK):
        c1 = min(c0 + ROW_CHUNK, tile_b)
        prod = x_ref[c0:c1, :] * w                      # (rows, tile_d), VPU
        if need_mask:
            prod = jnp.where(valid, prod, 0.0)
        zc = jnp.sum(prod, axis=-1, keepdims=True)      # (rows, 1), XLU
        o_ref[0:1, c0:c1] += jnp.transpose(zc)          # (1, rows), lane-dense

    @pl.when(k == pl.num_programs(1) - 1)
    def _finalize():
        z = o_ref[...] + b_ref[0]
        # Exact f32 sigmoid (review fix: no approximate reciprocal).  For a
        # padded trailing *batch* block the extra rows hold garbage; they are
        # sliced off in the wrapper, never contaminating valid rows.
        o_ref[...] = 1.0 / (1.0 + jnp.exp(-z))


def _choose_tiles(batch: int, dim: int, block_bytes: int):
    """Pick (tile_b, tile_d) for the x block, sized strictly by bytes.

    Common case: full feature width, as many batch rows as ~block_bytes allow
    (no fixed row cap), rounded to a multiple of 128 so the lane-dense
    (1, tile_b) output block is unmasked.  If even ~128 rows at full width
    would blow the budget (huge D), the feature axis is tiled as well.
    """
    row_bytes = dim * 4
    if batch * row_bytes <= block_bytes:
        return batch, dim  # single block; full-extent dims are layout-exempt
    rows = block_bytes // row_bytes
    if rows >= 128:
        tile_b = (rows // 128) * 128
        tile_b = min(tile_b, 16 * ROW_CHUNK)  # bound the in-kernel unroll
        return tile_b, dim
    # Very large dim: tile the feature axis too (second grid axis).
    tile_b = batch if batch <= 128 else 128
    tile_d = max(128, (block_bytes // (tile_b * 4) // 128) * 128)
    return tile_b, min(tile_d, dim)


def logistic_regression_forward(x, weight, bias, *,
                                block_bytes: int = 4 * 1024 * 1024,
                                x_buffer_count: int | None = None):
    """sigmoid(x @ weight.T + bias); weight: (1, D), bias: (1,). Returns (..., 1)."""
    lead = x.shape[:-1]
    dim = x.shape[-1]
    x2 = x.reshape(-1, dim).astype(jnp.float32)
    batch = x2.shape[0]
    w = weight.reshape(1, dim).astype(jnp.float32)
    b = bias.reshape(1).astype(jnp.float32)

    tile_b, tile_d = _choose_tiles(batch, dim, block_bytes)
    num_b = pl.cdiv(batch, tile_b)
    num_k = pl.cdiv(dim, tile_d)
    b_pad = num_b * tile_b

    # Scoped-VMEM request: x is double-buffered; (1, n) blocks pad their
    # sublane dim to 8; leave headroom for in-kernel temporaries.
    est = (2 * tile_b * tile_d * 4                     # x
           + 2 * 8 * tile_d * 4                        # weight
           + 2 * 8 * tile_b * 4                        # output block
           + 2 * min(ROW_CHUNK, tile_b) * max(tile_d, 128) * 4)  # temps
    vmem_limit = int(min(56 * 1024 * 1024, max(32 * 1024 * 1024, 2 * est)))

    if x_buffer_count is None:
        x_spec = pl.BlockSpec((tile_b, tile_d), lambda i, k: (i, k))
    else:
        # e.g. 3 on v7x to keep the DMA engine continuously fed; 2 elsewhere.
        x_spec = pl.BlockSpec((tile_b, tile_d), lambda i, k: (i, k),
                              pipeline_mode=pl.Buffered(x_buffer_count))

    out = pl.pallas_call(
        functools.partial(logreg_kernel, d_total=dim),
        out_shape=jax.ShapeDtypeStruct((1, b_pad), jnp.float32),
        grid_spec=pltpu.PrefetchScalarGridSpec(
            num_scalar_prefetch=0,
            grid=(num_b, num_k),  # reduction (feature) axis last
            in_specs=[
                x_spec,
                # Weight: resident across batch tiles, advances only with k.
                pl.BlockSpec((1, tile_d), lambda i, k: (0, k)),
                # Bias: whole (1,) array in SMEM, read as a scalar.
                pl.BlockSpec(memory_space=pltpu.MemorySpace.SMEM),
            ],
            # Lane-dense output block; index ignores k (resident accumulator).
            out_specs=pl.BlockSpec((1, tile_b), lambda i, k: (0, i)),
        ),
        compiler_params=pltpu.CompilerParams(
            dimension_semantics=("parallel", "arbitrary"),
            vmem_limit_bytes=vmem_limit,
        ),
        cost_estimate=pl.CostEstimate(
            flops=2 * batch * dim,
            transcendentals=batch,
            bytes_accessed=batch * dim * 4 + dim * 4 + 4 + b_pad * 4,
        ),
    )(x2, w, b)

    return out[0, :batch].reshape(*lead, 1)


if __name__ == "__main__":
    key = jax.random.PRNGKey(0)

    def make_case(case_key, batch, dim):
        kx, kw, kb = jax.random.split(case_key, 3)
        bound = 1.0 / math.sqrt(dim)  # mimic PyTorch Linear init range
        w = jax.random.uniform(kw, (1, dim), jnp.float32, -bound, bound)
        b = jax.random.uniform(kb, (1,), jnp.float32, -bound, bound)
        x = jax.random.normal(kx, (batch, dim), jnp.float32)
        return x, w, b

    def reference(x, w, b):
        # HIGHEST precision so the reference dot is true f32 (XLA's default
        # f32 matmul on TPU truncates to bf16 and would be the noisy side).
        z = jnp.dot(x, w.T, precision=jax.lax.Precision.HIGHEST) + b
        return jax.nn.sigmoid(z)

    # (batch, dim, block_bytes): the small block_bytes values force the tiled
    # code paths to be exercised at demo-friendly sizes.
    cases = [
        (257, 33, 4 * 1024 * 1024),   # single block, odd/unaligned shapes
        (1024, 256, 128 * 1024),      # batch-tiled: grid=(8, 1), lane-dense out
        (96, 500, 64 * 1024),         # feature-tiled: grid=(1, 4), masked tail
    ]
    keys = jax.random.split(key, len(cases))
    for case_key, (batch, dim, blk) in zip(keys, cases):
        x, w, b = make_case(case_key, batch, dim)
        out = jax.block_until_ready(
            logistic_regression_forward(x, w, b, block_bytes=blk))
        ref = reference(x, w, b)
        assert out.shape == (batch, 1), out.shape
        assert jnp.allclose(out, ref, atol=1e-5, rtol=1e-5), (
            f"mismatch vs reference for case {(batch, dim, blk)}: "
            f"max abs err = {jnp.max(jnp.abs(out - ref))}")

    print("KERNEL_OK")
</pallas_src>

<mosaic_0001>
module attributes {stable_mosaic.version = 11 : i64} {
  func.func @logreg_kernel(%arg0: i32, %arg1: i32, %arg2: memref<257x33xf32, #tpu.memory_space<vmem>>, %arg3: memref<1x33xf32, #tpu.memory_space<vmem>>, %arg4: memref<1xf32, #tpu.memory_space<smem>>, %arg5: memref<1x257xf32, #tpu.memory_space<vmem>>) attributes {dimension_semantics = [#tpu.dimension_semantics<parallel>, #tpu.dimension_semantics<arbitrary>], iteration_bounds = array<i64: 1, 1>, scalar_prefetch = 0 : i64, scratch_operands = 0 : i64, tpu.core_type = #tpu.core_type<tc>, window_params = [{transform_indices = @transform_0, window_bounds = array<i64: 257, 33>}, {transform_indices = @transform_1, window_bounds = array<i64: 1, 33>}, {transform_indices = @transform_2, window_bounds = array<i64: 1>}, {transform_indices = @transform_3, window_bounds = array<i64: 1, 257>}]} {
    %c0_i32 = arith.constant 0 : i32
    %0 = arith.cmpi eq, %arg1, %c0_i32 : i32
    %1 = arith.extui %0 : i1 to i32
    %c0_i32_0 = arith.constant 0 : i32
    %2 = arith.cmpi ne, %1, %c0_i32_0 : i32
    scf.if %2 {
      %cst_10 = arith.constant 0.000000e+00 : f32
      %16 = vector.broadcast %cst_10 : f32 to vector<1x257xf32>
      %c0_11 = arith.constant 0 : index
      %c0_12 = arith.constant 0 : index
      %17 = vector.load %arg5[%c0_11, %c0_12] : memref<1x257xf32, #tpu.memory_space<vmem>>, vector<1x257xf32>
      tpu.vector_store %arg5[%c0_11, %c0_12], %16 {strides = array<i32>} : memref<1x257xf32, #tpu.memory_space<vmem>>, vector<1x257xf32>,
    } else {
    }
    %c0 = arith.constant 0 : index
    %c0_1 = arith.constant 0 : index
    %3 = vector.load %arg3[%c0, %c0_1] : memref<1x33xf32, #tpu.memory_space<vmem>>, vector<1x33xf32>
    %c0_2 = arith.constant 0 : index
    %c0_3 = arith.constant 0 : index
    %4 = vector.load %arg2[%c0_2, %c0_3] : memref<257x33xf32, #tpu.memory_space<vmem>>, vector<257x33xf32>
    %5 = vector.broadcast %3 : vector<1x33xf32> to vector<257x33xf32>
    %6 = arith.mulf %4, %5 : vector<257x33xf32>
    %cst = arith.constant dense<0.000000e+00> : vector<257xf32>
    %7 = vector.multi_reduction <add>, %6, %cst [1] : vector<257x33xf32> to vector<257xf32>
    %8 = vector.shape_cast %7 : vector<257xf32> to vector<257x1xf32>
    %c0_4 = arith.constant 0 : index
    %c0_5 = arith.constant 0 : index
    %9 = vector.load %arg5[%c0_4, %c0_5] : memref<1x257xf32, #tpu.memory_space<vmem>>, vector<1x257xf32>
    %10 = tpu.transpose %8, [1, 0] : vector<257x1xf32> -> vector<1x257xf32>
    %11 = arith.addf %9, %10 : vector<1x257xf32>
    %c0_6 = arith.constant 0 : index
    %c0_7 = arith.constant 0 : index
    %12 = vector.load %arg5[%c0_6, %c0_7] : memref<1x257xf32, #tpu.memory_space<vmem>>, vector<1x257xf32>
    tpu.vector_store %arg5[%c0_6, %c0_7], %11 {strides = array<i32>} : memref<1x257xf32, #tpu.memory_space<vmem>>, vector<1x257xf32>,
    %c0_i32_8 = arith.constant 0 : i32
    %13 = arith.cmpi eq, %arg1, %c0_i32_8 : i32
    %14 = arith.extui %13 : i1 to i32
    %c0_i32_9 = arith.constant 0 : i32
    %15 = arith.cmpi ne, %14, %c0_i32_9 : i32
    scf.if %15 {
      %c0_10 = arith.constant 0 : index
      %c0_11 = arith.constant 0 : index
      %16 = vector.load %arg5[%c0_10, %c0_11] : memref<1x257xf32, #tpu.memory_space<vmem>>, vector<1x257xf32>
      %c0_12 = arith.constant 0 : index
      %17 = memref.load %arg4[%c0_12] : memref<1xf32, #tpu.memory_space<smem>>
      %18 = vector.broadcast %17 : f32 to vector<1x257xf32>
      %19 = arith.addf %16, %18 : vector<1x257xf32>
      %cst_13 = arith.constant 0.000000e+00 : f32
      %20 = vector.broadcast %cst_13 : f32 to vector<1x257xf32>
      %21 = arith.subf %20, %19 : vector<1x257xf32>
      %22 = math.exp %21 : vector<1x257xf32>
      %cst_14 = arith.constant 1.000000e+00 : f32
      %23 = vector.broadcast %cst_14 : f32 to vector<1x257xf32>
      %24 = arith.addf %23, %22 : vector<1x257xf32>
      %cst_15 = arith.constant 1.000000e+00 : f32
      %25 = vector.broadcast %cst_15 : f32 to vector<1x257xf32>
      %26 = arith.divf %25, %24 : vector<1x257xf32>
      %c0_16 = arith.constant 0 : index
      %c0_17 = arith.constant 0 : index
      %27 = vector.load %arg5[%c0_16, %c0_17] : memref<1x257xf32, #tpu.memory_space<vmem>>, vector<1x257xf32>
      tpu.vector_store %arg5[%c0_16, %c0_17], %26 {strides = array<i32>} : memref<1x257xf32, #tpu.memory_space<vmem>>, vector<1x257xf32>,
    } else {
    }
    return
  }
  func.func @transform_0(%arg0: i32, %arg1: i32) -> (i32, i32) {
    %c0_i32 = arith.constant 0 : i32
    return %arg0, %arg1 : i32, i32
  }
  func.func @transform_1(%arg0: i32, %arg1: i32) -> (i32, i32) {
    %c0_i32 = arith.constant 0 : i32
    %c0_i32_0 = arith.constant 0 : i32
    return %c0_i32, %arg1 : i32, i32
  }
  func.func @transform_2(%arg0: i32, %arg1: i32) -> i32 {
    %c0_i32 = arith.constant 0 : i32
    %c0_i32_0 = arith.constant 0 : i32
    return %c0_i32 : i32
  }
  func.func @transform_3(%arg0: i32, %arg1: i32) -> (i32, i32) {
    %c0_i32 = arith.constant 0 : i32
    %c0_i32_0 = arith.constant 0 : i32
    return %c0_i32, %arg0 : i32, i32
  }
}

</mosaic_0001>

<bundles_post_ra>
// kernel: tpu_custom_call.1
= control target key start
LH: loop header
LB: loop body
LE: loop exit
PB: predicated region body
PF: predicated region fallthrough
CT: control target
= control target key end

     0   :  { %vm95_vm0 = vcmask 269312   ;;  %s595_s0 = inlined_call_operand.vmem [shape: f32[257,33], index: 0, kind: input, shape index: {}]   ;;  %s596_s1 = inlined_call_operand.vmem [shape: f32[1,33], index: 1, kind: input, shape index: {}]   ;;  %s597_s2 = inlined_call_operand.<no memory space> [shape: f32[1], index: 2, kind: input, shape index: {}]   ;;  %s598_s3 = inlined_call_operand.hbm [shape: f32[1,257], index: 3, kind: output, shape index: {}]  }
   0x1   :  { %v30_v0 = vld [vmem:[%s595_s0 + $0x20] sm:$0xff]  ;;  %v28_v2 = vld [vmem:[%s595_s0 + $0x10] sm:$0xff]  ;;  %v31_v7 = vld [vmem:[%s595_s0 + $0x28] sm:$0xff] }
   0x2   :  { %v413_v1 = vld [vmem:[%s596_s1] ss:$0 sm:$0xff]  ;;  %v29_v8 = vld [vmem:[%s595_s0 + $0x18] sm:$0xff]  ;;  %v27_v12 = vld [vmem:[%s595_s0 + $0x8] sm:$0xff] }
   0x3   :  { %v26_v3 = vld [vmem:[%s595_s0] sm:$0xff]  ;;  %v66_v4 = vmul.f32 %v413_v1, %v30_v0  ;;  %v64_v5 = vmul.f32 %v413_v1, %v28_v2  ;;  %v67_v13 = vmul.f32 %v413_v1, %v31_v7  ;;  %v65_v14 = vmul.f32 %v413_v1, %v29_v8 }
   0x4   :  { %v62_v6 = vmul.f32 %v413_v1, %v26_v3 }
   0x5   :  { %v108_v9 = vsel %vm95_vm0, %v66_v4, 0.0  ;;  %v102_v10 = vsel %vm95_vm0, %v64_v5, 0.0 }
   0x6   :  { %v96_v11 = vsel %vm95_vm0, %v62_v6, 0.0  ;;  %109 = vadd.xlane.f32.xlu2 %v108_v9  ;;  %103 = vadd.xlane.f32.xlu1 %v102_v10 }
   0x7   :  { %97 = vadd.xlane.f32.xlu0 %v96_v11 }
   0x8   :  { %9 = vsyncpa [#allocation4], 0  ;;  %v63_v15 = vmul.f32 %v413_v1, %v27_v12  ;;  %v111_v16 = vsel %vm95_vm0, %v67_v13, 0.0  ;;  %v105_v17 = vsel %vm95_vm0, %v65_v14, 0.0  ;;  %v34_v19 = vld [vmem:[%s595_s0 + $0x40] sm:$0xff]  ;;  %v33_v20 = vld [vmem:[%s595_s0 + $0x38] sm:$0xff] }
   0x9   :  { %v32_v21 = vld [vmem:[%s595_s0 + $0x30] sm:$0xff]  ;;  %v70_v22 = vmul.f32 %v413_v1, %v34_v19  ;;  %v69_v23 = vmul.f32 %v413_v1, %v33_v20  ;;  %v37_v28 = vld [vmem:[%s595_s0 + $0x58] sm:$0xff]  ;;  %v35_v30 = vld [vmem:[%s595_s0 + $0x48] sm:$0xff]  ;;  %vm192_vm1 = vcmask 262144   ;;  %vm298_vm3 = vcmask 1040384   ;;  %s386_s24 = smov [#allocation3]  }
   0xa   :  { %v99_v18 = vsel %vm95_vm0, %v63_v15, 0.0  ;;  %v68_v24 = vmul.f32 %v413_v1, %v32_v21  ;;  %v36_v29 = vld [vmem:[%s595_s0 + $0x50] sm:$0xff]  ;;  %v73_v31 = vmul.f32 %v413_v1, %v37_v28  ;;  %v71_v33 = vmul.f32 %v413_v1, %v35_v30  ;;  %v39_v38 = vld [vmem:[%s595_s0 + $0x68] sm:$0xff]  ;;  %v38_v39 = vld [vmem:[%s595_s0 + $0x60] sm:$0xff]  ;;  %s341_s25 = sshll.u32 %s386_s24, 4  ;;  %s342_s25 = int_to_ptr.vmem [resolvable:$true] %s341_s25 }
   0xb   :  { %v120_v25 = vsel %vm95_vm0, %v70_v22, 0.0  ;;  %v117_v26 = vsel %vm95_vm0, %v69_v23, 0.0  ;;  %v72_v32 = vmul.f32 %v413_v1, %v36_v29  ;;  %v40_v37 = vld [vmem:[%s595_s0 + $0x70] sm:$0xff]  ;;  %v75_v41 = vmul.f32 %v413_v1, %v39_v38  ;;  %v50_v48 = vld [vmem:[%s595_s0 + $0xc0] sm:$0xff]  ;;  %v43_v50 = vld [vmem:[%s595_s0 + $0x88] sm:$0xff] }
   0xc   :  { %v114_v27 = vsel %vm95_vm0, %v68_v24, 0.0  ;;  %v129_v34 = vsel %vm95_vm0, %v73_v31, 0.0  ;;  %v123_v36 = vsel %vm95_vm0, %v71_v33, 0.0  ;;  %v76_v40 = vmul.f32 %v413_v1, %v40_v37  ;;  %v52_v42 = vld [vmem:[%s595_s0 + $0xd0] sm:$0xff]  ;;  %v42_v51 = vld [vmem:[%s595_s0 + $0x80] sm:$0xff]  ;;  %v41_v53 = vld [vmem:[%s595_s0 + $0x78] sm:$0xff] }
   0xd   :  { %v126_v35 = vsel %vm95_vm0, %v72_v32, 0.0  ;;  %v74_v43 = vmul.f32 %v413_v1, %v38_v39  ;;  %v88_v44 = vmul.f32 %v413_v1, %v52_v42  ;;  %v135_v47 = vsel %vm95_vm0, %v75_v41, 0.0  ;;  %v55_v57 = vld [vmem:[%s595_s0 + $0xe8] sm:$0xff]  ;;  %v53_v63 = vld [vmem:[%s595_s0 + $0xd8] sm:$0xff]  ;;  %v46_v2 = vld [vmem:[%s595_s0 + $0xa0] sm:$0xff] }
   0xe   :  { %112 = vadd.xlane.f32.xlu2 %v111_v16  ;;  %106 = vadd.xlane.f32.xlu1 %v105_v17  ;;  %v138_v46 = vsel %vm95_vm0, %v76_v40, 0.0  ;;  %v86_v52 = vmul.f32 %v413_v1, %v50_v48  ;;  %v79_v55 = vmul.f32 %v413_v1, %v43_v50  ;;  %v78_v56 = vmul.f32 %v413_v1, %v42_v51  ;;  %v45_v3 = vld [vmem:[%s595_s0 + $0x98] sm:$0xff]  ;;  %v44_v5 = vld [vmem:[%s595_s0 + $0x90] sm:$0xff]  ;;  %v47_v17 = vld [vmem:[%s595_s0 + $0xa8] sm:$0xff] }
   0xf   :  { %100 = vadd.xlane.f32.xlu0 %v99_v18  ;;  %v489_v45 = vsel %vm95_vm0, %v88_v44, 0.0  ;;  %v132_v49 = vsel %vm95_vm0, %v74_v43, 0.0  ;;  %v77_v58 = vmul.f32 %v413_v1, %v41_v53  ;;  %v91_v59 = vmul.f32 %v413_v1, %v55_v57  ;;  %v56_v12 = vld [vmem:[%s595_s0 + $0xf0] sm:$0xff]  ;;  %v49_v14 = vld [vmem:[%s595_s0 + $0xb8] sm:$0xff]  ;;  %v51_v18 = vld [vmem:[%s595_s0 + $0xc8] sm:$0xff] }
  0x10   :  { %v168_v54 = vsel %vm95_vm0, %v86_v52, 0.0  ;;  %v147_v61 = vsel %vm95_vm0, %v79_v55, 0.0  ;;  %v144_v62 = vsel %vm95_vm0, %v78_v56, 0.0  ;;  %v89_v4 = vmul.f32 %v413_v1, %v53_v63  ;;  %v48_v15 = vld [vmem:[%s595_s0 + $0xb0] sm:$0xff]  ;;  %v54_v23 = vld [vmem:[%s595_s0 + $0xe0] sm:$0xff]  ;;  %v57_v24 = vld [vmem:[%s595_s0 + $0xf8] sm:$0xff] }
  0x11   :  { %v183_v60 = vsel %vm95_vm0, %v91_v59, 0.0  ;;  %v141_v0 = vsel %vm95_vm0, %v77_v58, 0.0  ;;  %v82_v7 = vmul.f32 %v413_v1, %v46_v2  ;;  %v81_v8 = vmul.f32 %v413_v1, %v45_v3 }
  0x12   :  { %v177_v6 = vsel %vm95_vm0, %v89_v4, 0.0  ;;  %v80_v9 = vmul.f32 %v413_v1, %v44_v5  ;;  %v92_v16 = vmul.f32 %v413_v1, %v56_v12  ;;  %v87_v20 = vmul.f32 %v413_v1, %v51_v18 }
  0x13   :  { %v156_v10 = vsel %vm95_vm0, %v82_v7, 0.0  ;;  %v153_v11 = vsel %vm95_vm0, %v81_v8, 0.0  ;;  %v85_v21 = vmul.f32 %v413_v1, %v49_v14  ;;  %v84_v22 = vmul.f32 %v413_v1, %v48_v15 }
  0x14   :  { %v150_v13 = vsel %vm95_vm0, %v80_v9, 0.0  ;;  %v186_v19 = vsel %vm95_vm0, %v92_v16, 0.0  ;;  %v93_v28 = vmul.f32 %v413_v1, %v57_v24  ;;  %v385_v8 = vmov 0.0  }
  0x15   :  { %v165_v31 = vsel %vm95_vm0, %v85_v21, 0.0  ;;  %v162_v32 = vsel %vm95_vm0, %v84_v22, 0.0  ;;  %vm300_vm4 = vcmask 1041408   ;;  %v314_v18 = vstv %s597_s2  ;;  %s343_s2 = sshll.u32 %s598_s3, 4  ;;  %s344_s2 = int_to_ptr.hbm [resolvable:$true] %s343_s2 }
  0x16   :  { %121 = vadd.xlane.f32.xlu2 %v120_v25  ;;  %118 = vadd.xlane.f32.xlu1 %v117_v26  ;;  %v83_v25 = vmul.f32 %v413_v1, %v47_v17  ;;  %v171_v26 = vsel %vm95_vm0, %v87_v20, 0.0  ;;  %v189_v30 = vsel %vm95_vm0, %v93_v28, 0.0 }
  0x17   :  { %115 = vadd.xlane.f32.xlu0 %v114_v27  ;;  %v90_v27 = vmul.f32 %v413_v1, %v54_v23 }
  0x18   :  { %v159_v33 = vsel %vm95_vm0, %v83_v25, 0.0 }
  0x19   :  { %v180_v29 = vsel %vm95_vm0, %v90_v27, 0.0 }
  0x1e   :  { %130 = vadd.xlane.f32.xlu2 %v129_v34  ;;  %127 = vadd.xlane.f32.xlu1 %v126_v35  ;;  %v58_v34 = vld [vmem:[%s595_s0 + $0x100] sm:$0x1] }
  0x1f   :  { %124 = vadd.xlane.f32.xlu0 %v123_v36  ;;  %v94_v35 = vmul.f32 %v413_v1, %v58_v34 }
  0x21   :  { %v193_v36 = vsel %vm192_vm1, %v94_v35, 0.0 }
  0x26   :  { %139 = vadd.xlane.f32.xlu2 %v138_v46  ;;  %136 = vadd.xlane.f32.xlu1 %v135_v47 }
  0x27   :  { %133 = vadd.xlane.f32.xlu0 %v132_v49 }
  0x2e   :  { %148 = vadd.xlane.f32.xlu2 %v147_v61  ;;  %145 = vadd.xlane.f32.xlu1 %v144_v62 }
  0x2f   :  { %142 = vadd.xlane.f32.xlu0 %v141_v0 }
  0x36   :  { %157 = vadd.xlane.f32.xlu2 %v156_v10  ;;  %154 = vadd.xlane.f32.xlu1 %v153_v11 }
  0x37   :  { %151 = vadd.xlane.f32.xlu0 %v150_v13 }
  0x3e   :  { %166 = vadd.xlane.f32.xlu2 %v165_v31  ;;  %163 = vadd.xlane.f32.xlu1 %v162_v32 }
  0x3f   :  { %160 = vadd.xlane.f32.xlu0 %v159_v33 }
  0x46   :  { %175 = vadd.xlane.f32.xlu2 %v489_v45  ;;  %172 = vadd.xlane.f32.xlu1 %v171_v26 }
  0x47   :  { %169 = vadd.xlane.f32.xlu0 %v168_v54 }
  0x4e   :  { %184 = vadd.xlane.f32.xlu2 %v183_v60  ;;  %181 = vadd.xlane.f32.xlu1 %v180_v29 }
  0x4f   :  { %178 = vadd.xlane.f32.xlu0 %v177_v6  ;;  %v20_v6 = vlaneseq }
  0x51   :  { %vm579_vm2 = vcmp.lt.s32.totalorder %v20_v6, 257 }
  0x52   :  { %24 = vst.msk [vmem:[#allocation3] sm:$0x7] %vm579_vm2, %v385_v8 }
  0x56   :  { %194 = vadd.xlane.f32.xlu2 %v193_v36  ;;  %190 = vadd.xlane.f32.xlu1 %v189_v30 }
  0x57   :  { %187 = vadd.xlane.f32.xlu0 %v186_v19 }
  0x59   :  { %v196_v15 = vld [vmem:[#allocation3] sm:$0x7] }
  0x79   :  { %v110_v37 = vpop.xlane.xlu2 %109  ;;  %v104_v38 = vpop.xlane.xlu1 %103 }
  0x7a   :  { %v98_v39 = vpop.xlane.xlu0 %97 }
  0x80   :  { %197 = vxpose.xlu0.b32.start [1/16] (narrow) %v98_v39, 8 }
  0x81   :  { %v113_v40 = vpop.xlane.xlu2 %112  ;;  %v107_v41 = vpop.xlane.xlu1 %106 }
  0x82   :  { %v101_v42 = vpop.xlane.xlu0 %100 }
  0x88   :  { %198 = vxpose.xlu0.b32.cont [2/16] (narrow) %v101_v42, 8 }
  0x89   :  { %v122_v43 = vpop.xlane.xlu2 %121  ;;  %v119_v44 = vpop.xlane.xlu1 %118 }
  0x8a   :  { %v116_v45 = vpop.xlane.xlu0 %115 }
  0x90   :  { %199 = vxpose.xlu0.b32.cont [3/16] (narrow) %v104_v38, 8 }
  0x91   :  { %v131_v46 = vpop.xlane.xlu2 %130  ;;  %v128_v47 = vpop.xlane.xlu1 %127 }
  0x92   :  { %v125_v1 = vpop.xlane.xlu0 %124 }
  0x98   :  { %200 = vxpose.xlu0.b32.cont [4/16] (narrow) %v107_v41, 8 }
  0x99   :  { %v140_v48 = vpop.xlane.xlu2 %139  ;;  %v137_v49 = vpop.xlane.xlu1 %136 }
  0x9a   :  { %v134_v50 = vpop.xlane.xlu0 %133 }
  0xa0   :  { %201 = vxpose.xlu0.b32.cont [5/16] (narrow) %v110_v37, 8 }
  0xa1   :  { %v149_v51 = vpop.xlane.xlu2 %148  ;;  %v146_v52 = vpop.xlane.xlu1 %145 }
  0xa2   :  { %229 = vxpose.xlu1.b32.start [1/16] (narrow) %v146_v52, 8  ;;  %v143_v53 = vpop.xlane.xlu0 %142 }
  0xa8   :  { %202 = vxpose.xlu0.b32.cont [6/16] (narrow) %v113_v40, 8 }
  0xa9   :  { %v158_v54 = vpop.xlane.xlu2 %157  ;;  %v155_v57 = vpop.xlane.xlu1 %154 }
  0xaa   :  { %230 = vxpose.xlu1.b32.cont [2/16] (narrow) %v149_v51, 8  ;;  %v152_v55 = vpop.xlane.xlu0 %151 }
  0xb0   :  { %203 = vxpose.xlu0.b32.cont [7/16] (narrow) %v116_v45, 8 }
  0xb1   :  { %v167_v56 = vpop.xlane.xlu2 %166  ;;  %v164_v62 = vpop.xlane.xlu1 %163 }
  0xb2   :  { %231 = vxpose.xlu1.b32.cont [3/16] (narrow) %v152_v55, 8  ;;  %v161_v60 = vpop.xlane.xlu0 %160 }
  0xb8   :  { %204 = vxpose.xlu0.b32.cont [8/16] (narrow) %v119_v44, 8 }
  0xb9   :  { %v176_v58 = vpop.xlane.xlu2 %175  ;;  %v173_v0 = vpop.xlane.xlu1 %172 }
  0xba   :  { %232 = vxpose.xlu1.b32.cont [4/16] (narrow) %v155_v57, 8  ;;  %v170_v63 = vpop.xlane.xlu0 %169 }
  0xc0   :  { %205 = vxpose.xlu0.b32.cont [9/16] (narrow) %v122_v43, 8 }
  0xc1   :  { %v185_v59 = vpop.xlane.xlu2 %184  ;;  %v182_v3 = vpop.xlane.xlu1 %181 }
  0xc2   :  { %233 = vxpose.xlu1.b32.cont [5/16] (narrow) %v158_v54, 8  ;;  %v179_v2 = vpop.xlane.xlu0 %178 }
  0xc8   :  { %206 = vxpose.xlu0.b32.cont [10/16] (narrow) %v125_v1, 8 }
  0xc9   :  { %v195_v61 = vpop.xlane.xlu2 %194  ;;  %v191_v5 = vpop.xlane.xlu1 %190 }
  0xca   :  { %261 = vxpose.xlu2.b32.start.end [1/1] (short) (narrow) %v195_v61, 8  ;;  %234 = vxpose.xlu1.b32.cont [6/16] (narrow) %v161_v60, 8  ;;  %v188_v4 = vpop.xlane.xlu0 %187 }
  0xd0   :  { %207 = vxpose.xlu0.b32.cont [11/16] (narrow) %v128_v47, 8 }
  0xd2   :  { %235 = vxpose.xlu1.b32.cont [7/16] (narrow) %v164_v62, 8 }
  0xd8   :  { %208 = vxpose.xlu0.b32.cont [12/16] (narrow) %v131_v46, 8 }
  0xda   :  { %236 = vxpose.xlu1.b32.cont [8/16] (narrow) %v167_v56, 8 }
  0xe0   :  { %209 = vxpose.xlu0.b32.cont [13/16] (narrow) %v134_v50, 8 }
  0xe2   :  { %237 = vxpose.xlu1.b32.cont [9/16] (narrow) %v170_v63, 8 }
  0xe8   :  { %210 = vxpose.xlu0.b32.cont [14/16] (narrow) %v137_v49, 8 }
  0xea   :  { %238 = vxpose.xlu1.b32.cont [10/16] (narrow) %v173_v0, 8 }
  0xf0   :  { %211 = vxpose.xlu0.b32.cont [15/16] (narrow) %v140_v48, 8 }
  0xf2   :  { %239 = vxpose.xlu1.b32.cont [11/16] (narrow) %v176_v58, 8 }
  0xf8   :  { %212 = vxpose.xlu0.b32.end [16/16] (narrow) %v143_v53, 8 }
  0xfa   :  { %240 = vxpose.xlu1.b32.cont [12/16] (narrow) %v179_v2, 8 }
 0x102   :  { %241 = vxpose.xlu1.b32.cont [13/16] (narrow) %v182_v3, 8 }
 0x10a   :  { %242 = vxpose.xlu1.b32.cont [14/16] (narrow) %v185_v59, 8 }
 0x112   :  { %243 = vxpose.xlu1.b32.cont [15/16] (narrow) %v188_v4, 8 }
 0x11a   :  { %244 = vxpose.xlu1.b32.end [16/16] (narrow) %v191_v5, 8 }
 0x124   :  { %v213_v11 = vpop.trf.xlu0 }
 0x146   :  { %v245_v9 = vpop.trf.xlu1 }
 0x147   :  { %v296_v10 = vrot.slane %v245_v9, 7 }
 0x149   :  { %v299_v13 = vsel %vm298_vm3, %v213_v11, %v296_v10 }
 0x163   :  { %v277_v12 = vpop.trf.xlu2 }
 0x164   :  { %v297_v14 = vrot.slane %v277_v12, 6 }
 0x166   :  { %v301_v16 = vsel %vm300_vm4, %v299_v13, %v297_v14 }
 0x167   :  { %v303_v17 = vadd.f32 %v301_v16, %v196_v15 }
 0x169   :  { %308 = vst.msk [vmem:[#allocation3] sm:$0x7] %vm579_vm2, %v303_v17 }
 0x170   :  { %v312_v19 = vld [vmem:[#allocation3] sm:$0x7] }
 0x171   :  { %v315_v20 = vadd.f32 %v314_v18, %v312_v19 }
 0x173   :  { %v316_v21 = vsub.f32 0.0, %v315_v20 }
 0x175   :  { %v317_v22 = vmul.f32 1.442695, %v316_v21 }
 0x177   :  { %355 = vpow2.f32 %v317_v22 }
 0x17d   :  { %v356_v23 = vpop.eup %355 }
 0x17e   :  { %v319_v24 = vadd.f32 1.0, %v356_v23 }
 0x180   :  { %357 = vrcp.f32 %v319_v24  ;;  %v331_v28 = vand.u32 2147483648, %v319_v24  ;;  %v329_v30 = vand.u32 2147483647, %v319_v24  ;;  %vm325_vm6 = vweird.f32 %v319_v24 }
 0x182   :  { %v332_v32 = vor.u32 1.1754944e-38, %v331_v28  ;;  %vm330_vm8 = vcmp.eq.f32.partialorder %v329_v30, 8.507059e+37 }
 0x186   :  { %v358_v25 = vpop.eup %357 }
 0x187   :  { %v321_v26 = vmul.f32 %v358_v25, %v319_v24  ;;  %vm326_vm5 = vweird.f32 %v358_v25 }
 0x188   :  { %vm327_vm7 = vmor %vm325_vm6, %vm326_vm5 }
 0x189   :  { %v322_v27 = vsub.f32 1.0, %v321_v26 }
 0x18b   :  { %v323_v29 = vmul.f32 %v358_v25, %v322_v27 }
 0x18d   :  { %v324_v31 = vadd.f32 %v358_v25, %v323_v29 }
 0x18f   :  { %v328_v33 = vsel %vm327_vm7, %v358_v25, %v324_v31 }
 0x190   :  { %v333_v34 = vsel %vm330_vm8, %v332_v32, %v328_v33 }
 0x191   :  { %335 = vst.msk [vmem:[#allocation3] sm:$0x7] %vm579_vm2, %v333_v34 }
 0x192   :  { %346 = dma.vmem_to_hbm [thread:$0]  %s342_s25, 48, %s344_s2, [#allocation4]  }
 0x193   :  { %383 = dma.done.wait [#allocation4], 48  }
 0x194   :  { %384 = vsyncadd [#allocation4], 4294967248 }
 0x195   :  { %351 = vsyncpa [#allocation4], 1 }

</bundles_post_ra>
